<compile_context>
chip_gen: v5e
topology: v5e:2x2
jax: 0.10.0
libtpu: 0.0.40
codegen_flags: <defaults>
</compile_context>

<pallas_src>
import jax
import jax.numpy as jnp
from jax.experimental import pallas as pl
from jax.experimental.pallas import tpu as pltpu

NUM_CLASSES = 3


def _post_iou_kernel(yhat_ref, ypad_ref, o_ref):
    # yhat_ref: (Bt, C, H, W)  float logits
    # ypad_ref: (Bt, Hp, Wp)   int32 labels, zero-padded; Hp % 8 == 0, Wp % 128 == 0,
    #                          Hp > H, Wp > W so the pad ring doubles as the morphology border
    # o_ref:    (Bt, 1, 128)   f32: lane 0 = intersection count, lanes 1.. = union count
    bt, C, H, W = yhat_ref.shape
    Hp, Wp = ypad_ref.shape[1], ypad_ref.shape[2]

    # Hoisted out of the per-image loop (JAX does not CSE broadcasts/iotas).
    row = jax.lax.broadcasted_iota(jnp.int32, (Hp, Wp), 0)
    col = jax.lax.broadcasted_iota(jnp.int32, (Hp, Wp), 1)
    in_img = jnp.logical_and(row < H, col < W)
    out_lane = jax.lax.broadcasted_iota(jnp.int32, (1, 128), 1)

    def _ring3(x, axis, combine):
        # 3-point window combine along `axis` using XLU rotations; the circular wrap only
        # ever injects pad-ring values into real pixels (guaranteed by the wrapper padding),
        # so no boundary fix-up selects are required.
        n = x.shape[axis]
        return combine(combine(pltpu.roll(x, 1, axis), x), pltpu.roll(x, n - 1, axis))

    for bi in range(bt):
        # ---- channel argmax of the logits (softmax omitted: it preserves the argmax) ----
        best = yhat_ref[bi, 0]
        probas = jnp.zeros((H, W), jnp.int32)
        for c in range(1, C):
            v = yhat_ref[bi, c]
            take = v > best
            probas = jnp.where(take, jnp.int32(c), probas)
            best = jnp.where(take, v, best)

        # ---- fused 3x3 erosion / dilation on the class map ------------------------------
        yp = ypad_ref[bi]
        cls = jnp.where(yp == 2, jnp.int32(2),
                        jnp.where(yp == 1, jnp.int32(1), jnp.int32(0)))
        cmax = cls                                     # pad ring already 0 (dilate border)
        cmin = jnp.where(in_img, cls, jnp.int32(3))    # pad ring -> "+inf" (erode border)

        nmax = _ring3(_ring3(cmax, 0, jnp.maximum), 1, jnp.maximum)  # separable 3x3 max
        nmin = _ring3(_ring3(cmin, 0, jnp.minimum), 1, jnp.minimum)  # separable 3x3 min

        dil = nmax[:H, :W]     # == dilatedGroundtruth (class 2 overrides class 1)
        emin = nmin[:H, :W]
        # erodedGroundtruth != 0  <=>  all in-bound neighbours share class 1 or class 2
        ero_nz = jnp.logical_or(emin == 2, jnp.logical_and(emin == 1, dil == 1))

        inter = jnp.logical_and(dil == probas, dil != 0)
        union = jnp.logical_or(ero_nz, probas != 0)
        inter_cnt = jnp.sum(inter.astype(jnp.float32))
        union_cnt = jnp.sum(union.astype(jnp.float32))

        # Lane-dense (1, 128) output row: lane 0 holds the intersection count, the rest
        # hold the union count (ratio + mean are computed in the plain-JAX glue).
        o_ref[bi] = jnp.where(out_lane < 1, inter_cnt, union_cnt)


def _round_up(x, m):
    return ((x + m - 1) // m) * m


def _pick_block_b(batch, per_elem_bytes):
    """Images per grid step: largest divisor of `batch` that (a) keeps double-buffered
    inputs inside a conservative VMEM budget and (b) leaves >= 2 grid steps so both
    v7x TensorCores get work (no effect on 1-TC v5e/v6e)."""
    budget = 40 * 1024 * 1024
    cap = max(1, min(8, budget // max(1, 2 * per_elem_bytes)))
    best = 1
    for cand in range(1, min(cap, batch) + 1):
        if batch % cand == 0 and (batch // cand >= 2 or batch == 1):
            best = cand
    return best


def post_iou(yhat, y):
    """yhat: (B, C, H, W) float logits, y: (B, H, W) integer labels -> scalar mean IoU."""
    B, C, H, W = yhat.shape
    # Pad the (cheap) label plane to an (8, 128)-aligned shape with >= 1 pad row/col: the
    # zero pad ring is the morphology border and aligned dims keep pltpu.roll on the fast
    # XLU path.  The (heavy) logits tensor is NOT padded, so HBM traffic is unchanged.
    Hp = _round_up(H + 1, 8)
    Wp = _round_up(W + 1, 128)
    y_pad = jnp.zeros((B, Hp, Wp), jnp.int32).at[:, :H, :W].set(y.astype(jnp.int32))

    per_elem = C * H * W * yhat.dtype.itemsize + Hp * Wp * 4 + 128 * 4
    bt = _pick_block_b(B, per_elem)
    # TODO(synk): for single images whose (C,H,W) logit slab exceeds ~8 MiB, add H-strip
    # tiling with a 1-row halo + count accumulation instead of whole-slab blocks.
    vmem_limit = int(min(56 * 1024 * 1024, max(32 * 1024 * 1024, 4 * bt * per_elem)))

    out = pl.pallas_call(
        _post_iou_kernel,
        out_shape=jax.ShapeDtypeStruct((B, 1, 128), jnp.float32),
        grid=(B // bt,),
        in_specs=[
            pl.BlockSpec((bt, C, H, W), lambda b: (b, 0, 0, 0)),
            pl.BlockSpec((bt, Hp, Wp), lambda b: (b, 0, 0)),
        ],
        out_specs=pl.BlockSpec((bt, 1, 128), lambda b: (b, 0, 0)),
        compiler_params=pltpu.CompilerParams(
            dimension_semantics=("parallel",),
            vmem_limit_bytes=vmem_limit,
        ),
    )(yhat, y_pad)

    inter = out[:, 0, 0]           # (B,) intersection counts
    union = out[:, 0, 1]           # (B,) union counts
    # Same semantics as the torch reference: per-image ratio (NaN if an image has an empty
    # union, exactly like intersectionCount/unionCount in torch), then the batch mean.
    return jnp.mean(inter / union)


if __name__ == "__main__":
    key = jax.random.PRNGKey(0)
    k1, k2 = jax.random.split(key)
    B, C, H, W = 2, NUM_CLASSES, 16, 16
    yhat = jax.random.normal(k1, (B, C, H, W), dtype=jnp.float32)
    y = jax.random.randint(k2, (B, H, W), 0, C, dtype=jnp.int32)

    score = post_iou(yhat, y)
    jax.block_until_ready(score)
    _ = float(score)  # the torch module returns a Python float via .item()
    print("KERNEL_OK")
</pallas_src>

<mosaic_0001>
module attributes {stable_mosaic.version = 11 : i64} {
  func.func @_post_iou_kernel(%arg0: i32, %arg1: memref<1x3x16x16xf32, #tpu.memory_space<vmem>>, %arg2: memref<1x24x128xi32, #tpu.memory_space<vmem>>, %arg3: memref<1x1x128xf32, #tpu.memory_space<vmem>>) attributes {dimension_semantics = [#tpu.dimension_semantics<parallel>], iteration_bounds = array<i64: 2>, scalar_prefetch = 0 : i64, scratch_operands = 0 : i64, tpu.core_type = #tpu.core_type<tc>, window_params = [{transform_indices = @transform_0, window_bounds = array<i64: 1, 3, 16, 16>}, {transform_indices = @transform_1, window_bounds = array<i64: 1, 24, 128>}, {transform_indices = @transform_2, window_bounds = array<i64: 1, 1, 128>}]} {
    %0 = tpu.iota {dimensions = array<i32: 0>} : vector<24x128xi32>
    %1 = tpu.iota {dimensions = array<i32: 1>} : vector<24x128xi32>
    %c16_i32 = arith.constant 16 : i32
    %2 = vector.broadcast %c16_i32 : i32 to vector<24x128xi32>
    %3 = arith.cmpi slt, %0, %2 : vector<24x128xi32>
    %c16_i32_0 = arith.constant 16 : i32
    %4 = vector.broadcast %c16_i32_0 : i32 to vector<24x128xi32>
    %5 = arith.cmpi slt, %1, %4 : vector<24x128xi32>
    %6 = arith.andi %3, %5 : vector<24x128xi1>
    %7 = tpu.iota {dimensions = array<i32: 1>} : vector<1x128xi32>
    %c0 = arith.constant 0 : index
    %c0_1 = arith.constant 0 : index
    %c0_2 = arith.constant 0 : index
    %c0_3 = arith.constant 0 : index
    %8 = vector.load %arg1[%c0, %c0_1, %c0_2, %c0_3] : memref<1x3x16x16xf32, #tpu.memory_space<vmem>>, vector<1x1x16x16xf32>
    %9 = vector.shape_cast %8 : vector<1x1x16x16xf32> to vector<16x16xf32>
    %c0_i32 = arith.constant 0 : i32
    %10 = vector.broadcast %c0_i32 : i32 to vector<16x16xi32>
    %c0_4 = arith.constant 0 : index
    %c1 = arith.constant 1 : index
    %c0_5 = arith.constant 0 : index
    %c0_6 = arith.constant 0 : index
    %11 = vector.load %arg1[%c0_4, %c1, %c0_5, %c0_6] : memref<1x3x16x16xf32, #tpu.memory_space<vmem>>, vector<1x1x16x16xf32>
    %12 = vector.shape_cast %11 : vector<1x1x16x16xf32> to vector<16x16xf32>
    %13 = arith.cmpf ogt, %12, %9 : vector<16x16xf32>
    %c1_i32 = arith.constant 1 : i32
    %14 = vector.broadcast %c1_i32 : i32 to vector<16x16xi32>
    %15 = arith.select %13, %14, %10 : vector<16x16xi1>, vector<16x16xi32>
    %16 = arith.select %13, %12, %9 : vector<16x16xi1>, vector<16x16xf32>
    %c0_7 = arith.constant 0 : index
    %c2 = arith.constant 2 : index
    %c0_8 = arith.constant 0 : index
    %c0_9 = arith.constant 0 : index
    %17 = vector.load %arg1[%c0_7, %c2, %c0_8, %c0_9] : memref<1x3x16x16xf32, #tpu.memory_space<vmem>>, vector<1x1x16x16xf32>
    %18 = vector.shape_cast %17 : vector<1x1x16x16xf32> to vector<16x16xf32>
    %19 = arith.cmpf ogt, %18, %16 : vector<16x16xf32>
    %c2_i32 = arith.constant 2 : i32
    %20 = vector.broadcast %c2_i32 : i32 to vector<16x16xi32>
    %21 = arith.select %19, %20, %15 : vector<16x16xi1>, vector<16x16xi32>
    %c0_10 = arith.constant 0 : index
    %c0_11 = arith.constant 0 : index
    %c0_12 = arith.constant 0 : index
    %22 = vector.load %arg2[%c0_10, %c0_11, %c0_12] : memref<1x24x128xi32, #tpu.memory_space<vmem>>, vector<1x24x128xi32>
    %23 = vector.shape_cast %22 : vector<1x24x128xi32> to vector<24x128xi32>
    %c2_i32_13 = arith.constant 2 : i32
    %24 = vector.broadcast %c2_i32_13 : i32 to vector<24x128xi32>
    %25 = arith.cmpi eq, %23, %24 : vector<24x128xi32>
    %c1_i32_14 = arith.constant 1 : i32
    %26 = vector.broadcast %c1_i32_14 : i32 to vector<24x128xi32>
    %27 = arith.cmpi eq, %23, %26 : vector<24x128xi32>
    %c1_i32_15 = arith.constant 1 : i32
    %c0_i32_16 = arith.constant 0 : i32
    %28 = vector.broadcast %c1_i32_15 : i32 to vector<24x128xi32>
    %29 = vector.broadcast %c0_i32_16 : i32 to vector<24x128xi32>
    %30 = arith.select %27, %28, %29 : vector<24x128xi1>, vector<24x128xi32>
    %c2_i32_17 = arith.constant 2 : i32
    %31 = vector.broadcast %c2_i32_17 : i32 to vector<24x128xi32>
    %32 = arith.select %25, %31, %30 : vector<24x128xi1>, vector<24x128xi32>
    %c3_i32 = arith.constant 3 : i32
    %33 = vector.broadcast %c3_i32 : i32 to vector<24x128xi32>
    %34 = arith.select %6, %32, %33 : vector<24x128xi1>, vector<24x128xi32>
    %c1_i32_18 = arith.constant 1 : i32
    %35 = tpu.dynamic_rotate %32 by %c1_i32_18 dim 0 : vector<24x128xi32>, i32 -> vector<24x128xi32>
    %36 = arith.maxsi %35, %32 : vector<24x128xi32>
    %c23_i32 = arith.constant 23 : i32
    %37 = tpu.dynamic_rotate %32 by %c23_i32 dim 0 : vector<24x128xi32>, i32 -> vector<24x128xi32>
    %38 = arith.maxsi %36, %37 : vector<24x128xi32>
    %c1_i32_19 = arith.constant 1 : i32
    %39 = tpu.dynamic_rotate %38 by %c1_i32_19 dim 1 : vector<24x128xi32>, i32 -> vector<24x128xi32>
    %40 = arith.maxsi %39, %38 : vector<24x128xi32>
    %c127_i32 = arith.constant 127 : i32
    %41 = tpu.dynamic_rotate %38 by %c127_i32 dim 1 : vector<24x128xi32>, i32 -> vector<24x128xi32>
    %42 = arith.maxsi %40, %41 : vector<24x128xi32>
    %c1_i32_20 = arith.constant 1 : i32
    %43 = tpu.dynamic_rotate %34 by %c1_i32_20 dim 0 : vector<24x128xi32>, i32 -> vector<24x128xi32>
    %44 = arith.minsi %43, %34 : vector<24x128xi32>
    %c23_i32_21 = arith.constant 23 : i32
    %45 = tpu.dynamic_rotate %34 by %c23_i32_21 dim 0 : vector<24x128xi32>, i32 -> vector<24x128xi32>
    %46 = arith.minsi %44, %45 : vector<24x128xi32>
    %c1_i32_22 = arith.constant 1 : i32
    %47 = tpu.dynamic_rotate %46 by %c1_i32_22 dim 1 : vector<24x128xi32>, i32 -> vector<24x128xi32>
    %48 = arith.minsi %47, %46 : vector<24x128xi32>
    %c127_i32_23 = arith.constant 127 : i32
    %49 = tpu.dynamic_rotate %46 by %c127_i32_23 dim 1 : vector<24x128xi32>, i32 -> vector<24x128xi32>
    %50 = arith.minsi %48, %49 : vector<24x128xi32>
    %51 = vector.extract_strided_slice %42 {offsets = [0, 0], sizes = [16, 16], strides = [1, 1]} : vector<24x128xi32> to vector<16x16xi32>
    %52 = vector.extract_strided_slice %50 {offsets = [0, 0], sizes = [16, 16], strides = [1, 1]} : vector<24x128xi32> to vector<16x16xi32>
    %c2_i32_24 = arith.constant 2 : i32
    %53 = vector.broadcast %c2_i32_24 : i32 to vector<16x16xi32>
    %54 = arith.cmpi eq, %52, %53 : vector<16x16xi32>
    %c1_i32_25 = arith.constant 1 : i32
    %55 = vector.broadcast %c1_i32_25 : i32 to vector<16x16xi32>
    %56 = arith.cmpi eq, %52, %55 : vector<16x16xi32>
    %c1_i32_26 = arith.constant 1 : i32
    %57 = vector.broadcast %c1_i32_26 : i32 to vector<16x16xi32>
    %58 = arith.cmpi eq, %51, %57 : vector<16x16xi32>
    %59 = arith.andi %56, %58 : vector<16x16xi1>
    %60 = arith.ori %54, %59 : vector<16x16xi1>
    %61 = arith.cmpi eq, %51, %21 : vector<16x16xi32>
    %c0_i32_27 = arith.constant 0 : i32
    %62 = vector.broadcast %c0_i32_27 : i32 to vector<16x16xi32>
    %63 = arith.cmpi ne, %51, %62 : vector<16x16xi32>
    %64 = arith.andi %61, %63 : vector<16x16xi1>
    %c0_i32_28 = arith.constant 0 : i32
    %65 = vector.broadcast %c0_i32_28 : i32 to vector<16x16xi32>
    %66 = arith.cmpi ne, %21, %65 : vector<16x16xi32>
    %67 = arith.ori %60, %66 : vector<16x16xi1>
    %68 = arith.extui %64 : vector<16x16xi1> to vector<16x16xi32>
    %69 = arith.sitofp %68 : vector<16x16xi32> to vector<16x16xf32>
    %70 = vector.shape_cast %69 : vector<16x16xf32> to vector<1x16x16xf32>
    %cst = arith.constant dense<0.000000e+00> : vector<1xf32>
    %71 = vector.multi_reduction <add>, %70, %cst [1, 2] : vector<1x16x16xf32> to vector<1xf32>
    %72 = vector.shape_cast %71 : vector<1xf32> to vector<1x1x1xf32>
    %73 = vector.extract %72[0, 0, 0] : f32 from vector<1x1x1xf32>
    %74 = arith.extui %67 : vector<16x16xi1> to vector<16x16xi32>
    %75 = arith.sitofp %74 : vector<16x16xi32> to vector<16x16xf32>
    %76 = vector.shape_cast %75 : vector<16x16xf32> to vector<1x16x16xf32>
    %cst_29 = arith.constant dense<0.000000e+00> : vector<1xf32>
    %77 = vector.multi_reduction <add>, %76, %cst_29 [1, 2] : vector<1x16x16xf32> to vector<1xf32>
    %78 = vector.shape_cast %77 : vector<1xf32> to vector<1x1x1xf32>
    %79 = vector.extract %78[0, 0, 0] : f32 from vector<1x1x1xf32>
    %c1_i32_30 = arith.constant 1 : i32
    %80 = vector.broadcast %c1_i32_30 : i32 to vector<1x128xi32>
    %81 = arith.cmpi slt, %7, %80 : vector<1x128xi32>
    %82 = vector.broadcast %73 : f32 to vector<1x128xf32>
    %83 = vector.broadcast %79 : f32 to vector<1x128xf32>
    %84 = arith.select %81, %82, %83 : vector<1x128xi1>, vector<1x128xf32>
    %c0_31 = arith.constant 0 : index
    %c0_32 = arith.constant 0 : index
    %c0_33 = arith.constant 0 : index
    %85 = vector.load %arg3[%c0_31, %c0_32, %c0_33] : memref<1x1x128xf32, #tpu.memory_space<vmem>>, vector<1x1x128xf32>
    %86 = vector.shape_cast %85 : vector<1x1x128xf32> to vector<1x128xf32>
    %87 = vector.shape_cast %84 : vector<1x128xf32> to vector<1x1x128xf32>
    tpu.vector_store %arg3[%c0_31, %c0_32, %c0_33], %87 {strides = array<i32>} : memref<1x1x128xf32, #tpu.memory_space<vmem>>, vector<1x1x128xf32>,
    return
  }
  func.func @transform_0(%arg0: i32) -> (i32, i32, i32, i32) {
    %c0_i32 = arith.constant 0 : i32
    %c0_i32_0 = arith.constant 0 : i32
    %c0_i32_1 = arith.constant 0 : i32
    %c0_i32_2 = arith.constant 0 : i32
    return %arg0, %c0_i32, %c0_i32_0, %c0_i32_1 : i32, i32, i32, i32
  }
  func.func @transform_1(%arg0: i32) -> (i32, i32, i32) {
    %c0_i32 = arith.constant 0 : i32
    %c0_i32_0 = arith.constant 0 : i32
    %c0_i32_1 = arith.constant 0 : i32
    return %arg0, %c0_i32, %c0_i32_0 : i32, i32, i32
  }
  func.func @transform_2(%arg0: i32) -> (i32, i32, i32) {
    %c0_i32 = arith.constant 0 : i32
    %c0_i32_0 = arith.constant 0 : i32
    %c0_i32_1 = arith.constant 0 : i32
    return %arg0, %c0_i32, %c0_i32_0 : i32, i32, i32
  }
}

</mosaic_0001>

<bundles_post_ra>
// kernel: tpu_custom_call.1
= control target key start
LH: loop header
LB: loop body
LE: loop exit
PB: predicated region body
PF: predicated region fallthrough
CT: control target
= control target key end

     0   :  { %7 = vsyncpa [#allocation3], 0  ;;  %s911_s0 = inlined_call_operand.hbm [shape: f32[2,3,16,16], index: 0, kind: input, shape index: {}]   ;;  %s912_s1 = inlined_call_operand.hbm [shape: s32[2,24,128], index: 1, kind: input, shape index: {}]   ;;  %s913_s2 = inlined_call_operand.hbm [shape: f32[2,1,128], index: 2, kind: output, shape index: {}]  }
   0x1   :  { %9 = vsyncpa [#allocation3 + $0x1], 0 }
   0x2   :  { %10 = vsyncpa [#allocation6], 0 }
   0x3   :  { %12 = vsyncpa [#allocation6 + $0x1], 0 }
   0x4   :  { %13 = vsyncpa [#allocation4], 0 }
   0x5   :  { %15 = vsyncpa [#allocation4 + $0x1], 0  ;;  %s722_s9 = smov 0   ;;  %s724_s10 = smov 0  }
   0x6   :  { %s726_s11 = smov 0   ;;  %s728_s12 = smov 0  }
   0x7 LB: > { %s743_s13 = sadd.s32 4294967295, %s698_s12   ;;  %s484_s14 = sadd.s32 4294967294, %s698_s12   ;;  %s698_s12 = sphi %s728_s12, %s927_s12   ;;  %s694_s11 = sphi %s726_s11, %s926_s11   ;;  %s690_s10 = sphi %s724_s10, %s925_s10   ;;  %s686_s9 = sphi %s722_s9, %s924_s9  }
   0x8   : > { %s747_s15 = sadd.s32 1, %s698_s12   ;;  %s28_s16 = sadd.s32 1, %s694_s11 }
   0x9   : > { %s25_s17 = ssub.s32 %s698_s12, %s747_s15  ;;  %p35_p0 = scmp.ne.s32.totalorder %s694_s11, %s690_s10 }
   0xa   : > { %p26_p1 = scmp.eq.s32.totalorder %s25_s17, 0  ;;  %p36_p2 = scmp.eq.s32.totalorder %s698_s12, 0 }
   0xb   : > { %p41_p3 = scmp.ne.s32.totalorder %s690_s10, %s686_s9  ;;  %p42_p4 = scmp.eq.s32.totalorder %s743_s13, 0 }
   0xc   : > { %s759_s18 = scalar_select %p26_p1, %s694_s11, %s28_s16  }
   0xd   : > { %p37_p5 = por %p36_p2, %p35_p0  ;;  %p761_p6 = por %p42_p4, %p41_p3 }
   0xe   : > { %p91_p7 = scmp.eq.s32.totalorder %s743_s13, 1  ;;  %p97_p8 = scmp.eq.s32.totalorder %s484_s14, 1 }
   0xf   : > { %p486_p9 = scmp.ge.s32.totalorder %s698_s12, 2  ;;  %p527_p10 = scmp.lt.s32.totalorder %s698_s12, 2 }
  0x10   : > { %p768_p11 = por %p91_p7, %p35_p0  ;;  %p772_p12 = por %p97_p8, %p41_p3 }
  0x11   : > { %s777_s22 = sand.u32 1, %s694_s11   ;;  %s501_s23 = smul.u32 48, %s698_s12 }
  0x12   : > { %s500_s24 = smul.u32 48, %s777_s22  ;;  %p784_p13 = pnand %p527_p10, %p37_p5 }
  0x13   : > { %s126_s27 = scalar_lea.hbm %s911_s0, %s501_s23  ;;  %s118_s4 = scalar_lea.sflag [#allocation3], %s777_s22 }
  0x14   : > { %s127_s29 = sshll.u32 %s126_s27, 4  ;;  %s121_s30 = scalar_lea.vmem [#allocation2], %s500_s24  ;;  %s128_s29 = int_to_ptr.hbm [resolvable:$true] %s127_s29 }
  0x15   : > { %s129_s3 = sshll.u32 %s121_s30, 4  ;;  %s568_s5 = sshra.s32 %s128_s29, 4  ;;  %s130_s3 = int_to_ptr.vmem [resolvable:$true] %s129_s3  ;;  %s569_s5 = int_to_ptr.hbm [resolvable:$true] %s568_s5 }
  0x16   : > { %s570_s6 = scalar_lea.hbm %s569_s5, 48  ;;  %p572_p1 = pneg %p784_p13 }
  0x17   : > { %p571_p0 = scmp.ne.s32.totalorder %s569_s5, %s570_s6  ;;  %s575_s14 = scalar_lea.hbm %s911_s0, 96 }
  0x18   : > { %p576_p4 = scmp.lt.s32.totalorder %s569_s5, %s911_s0  ;;  %p577_p5 = scmp.lt.s32.totalorder %s575_s14, %s570_s6 }
  0x19   : > { %p573_p2 = pnand %p572_p1, %p571_p0 }
  0x1a   : > { %p578_p7 = por %p577_p5, %p576_p4 }
  0x1b   : > { %p574_p3 = pneg %p573_p2 }
  0x1d   : > { %p579_p8 = pnand %p578_p7, %p574_p3 }
  0x1f   : > { %582 = shalt.err (!%p579_p8)
}
  0x20   : > { %s914_s23 = smov 128   ;;  %s701_s24 = smov 8  }
  0x21   : > { %519 = dma.hbm_to_vmem [thread:$0]  (!%p784_p13), %s128_s29, 768, %s130_s3, %s118_s4, %s914_s23, %s914_s23, %s701_s24  }
  0x22   : > { %p489_p10 = scmp.ge.s32.totalorder %s698_s12, 1  ;;  %p159_p0 = scmp.lt.s32.totalorder %s698_s12, 3 }
  0x23   : > { %s502_s25 = smul.u32 24, %s777_s22  ;;  %s140_s16 = scalar_lea.sflag [#allocation6], %s777_s22 }
  0x24   : > { %p808_p2 = pnand %p489_p10, %p159_p0  ;;  %s503_s27 = smul.u32 24, %s698_s12 }
  0x25   : > { %s143_s7 = scalar_lea.vmem [#allocation5], %s502_s25  ;;  %s605_s23 = scalar_lea.hbm %s912_s1, 48 }
  0x26   : > { %s148_s6 = scalar_lea.hbm %s912_s1, %s503_s27  ;;  %s151_s8 = sshll.u32 %s143_s7, 4  ;;  %s152_s8 = int_to_ptr.vmem [resolvable:$true] %s151_s8 }
  0x27   : > { %s149_s14 = sshll.u32 %s148_s6, 4  ;;  %s150_s14 = int_to_ptr.hbm [resolvable:$true] %s149_s14 }
  0x28   : > { %s598_s29 = sshra.s32 %s150_s14, 4  ;;  %s599_s29 = int_to_ptr.hbm [resolvable:$true] %s598_s29 }
  0x29   : > { %s600_s3 = scalar_lea.hbm %s599_s29, 24  ;;  %p606_p7 = scmp.lt.s32.totalorder %s599_s29, %s912_s1 }
  0x2a   : > { %p601_p3 = scmp.ne.s32.totalorder %s599_s29, %s600_s3  ;;  %p607_p8 = scmp.lt.s32.totalorder %s605_s23, %s600_s3 }
  0x2c   : > { %p603_p4 = pnand %p601_p3, %p572_p1  ;;  %p608_p10 = por %p607_p8, %p606_p7 }
  0x2e   : > { %p604_p5 = pneg %p603_p4 }
  0x30   : > { %p609_p0 = pnand %p608_p10, %p604_p5 }
  0x32   : > { %612 = shalt.err (!%p609_p0)
}
  0x33   : > { %s921_s22 = smov 128   ;;  %163 = sbr.rel (%p808_p2) target bundleno = 402 (0x192), region = 28 }
  0x34   : > { %522 = dma.hbm_to_vmem [thread:$0]  (!%p784_p13), %s150_s14, 384, %s152_s8, %s140_s16, %s921_s22, %s921_s22, %s701_s24  }
  0x35   : > { %s834_s25 = sand.u32 (!%p808_p2), 1, %s690_s10  }
  0x36   : > { %s504_s5 = smul.u32 (!%p808_p2), 48, %s834_s25  ;;  %s166_s23 = scalar_lea.sflag (!%p808_p2), [#allocation3], %s834_s25 }
  0x38   : > { %s838_s6 = scalar_lea.vmem [#allocation2], %s504_s5 }
  0x39   : > { %673 = dma.done.wait (%p761_p6), %s166_s23, 768  }
  0x3a   : > { %675 = vsyncadd (%p761_p6), %s166_s23, 4294966528  ;;  %s505_s28 = smul.u32 24, %s834_s25  ;;  %s176_s24 = scalar_lea.sflag [#allocation6], %s834_s25 }
  0x3c   : > { %s179_s26 = scalar_lea.vmem [#allocation5], %s505_s28 }
  0x3d   : > { %677 = dma.done.wait (%p761_p6), %s176_s24, 384  }
  0x3e   : > { %679 = vsyncadd (%p761_p6), %s176_s24, 4294966912  ;;  %v205_v0 = vlaneseq  ;;  %v236_v3 = vld [vmem:[%s179_s26] sm:$0xff]  ;;  %v237_v4 = vld [vmem:[%s179_s26 + $0x8] sm:$0xff]  ;;  %v702_v6 = vmov 3   ;;  %v703_v9 = vmov 0   ;;  %s704_s19 = smov 1   ;;  %s391_s16 = scalar_lea.hbm %s913_s2, %s743_s13 }
  0x3f   : > { %v238_v5 = vld [vmem:[%s179_s26 + $0x10] sm:$0xff]  ;;  %v292_v7 = vrot.slane %v702_v6, 7  ;;  %v301_v8 = vrot.slane %v702_v6, 1  ;;  %vm239_vm1 = vcmp.eq.s32.totalorder %v236_v3, 2  ;;  %vm240_vm2 = vcmp.eq.s32.totalorder %v237_v4, 2  ;;  %s705_s7 = smov 127  }
  0x40   : > { %v206_v1 = vshrl.u32 %v205_v0, 7  ;;  %v850_v2 = vand.u32 127, %v205_v0  ;;  %vm241_vm3 = vcmp.eq.s32.totalorder %v238_v5, 2  ;;  %vm242_vm4 = vcmp.eq.s32.totalorder %v236_v3, 1  ;;  %v218_v44 = vld [vmem:[%s838_s6] sm:$0xff]  ;;  %v490_v45 = vld [vmem:[%s838_s6 + $0x10] sm:$0xff] }
  0x41   : > { %vm243_vm5 = vcmp.eq.s32.totalorder %v237_v4, 1  ;;  %vm244_vm6 = vcmp.eq.s32.totalorder %v238_v5, 1  ;;  %v245_v10 = vsel %vm242_vm4, 1, %v703_v9  ;;  %v492_v48 = vld [vmem:[%s838_s6 + $0x20] sm:$0xff]  ;;  %v219_v49 = vld [vmem:[%s838_s6 + $0x8] sm:$0xff]  ;;  %v491_v50 = vld [vmem:[%s838_s6 + $0x18] sm:$0xff] }
  0x42   : > { %vm257_vm0 = vcmp.lt.s32.totalorder %v206_v1, 1  ;;  %vm214_vm7 = vcmp.lt.s32.totalorder %v850_v2, 16  ;;  %v246_v11 = vsel %vm243_vm5, 1, %v703_v9  ;;  %v247_v12 = vsel %vm244_vm6, 1, %v703_v9  ;;  %v493_v58 = vld [vmem:[%s838_s6 + $0x28] sm:$0xff]  ;;  %s204_s29 = scalar_lea.vmem [#allocation7], %s834_s25 }
  0x43   : > { %v248_v13 = vsel %vm239_vm1, 2, %v245_v10  ;;  %vm267_vm8 = vcmp.lt.s32.totalorder %v206_v1, 7  ;;  %v249_v14 = vsel %vm240_vm2, 2, %v246_v11  ;;  %v250_v15 = vsel %vm241_vm3, 2, %v247_v12  ;;  %s393_s3 = sshll.u32 %s204_s29, 4  ;;  %s395_s17 = sshll.u32 %s391_s16, 4  ;;  %s394_s3 = int_to_ptr.vmem [resolvable:$true] %s393_s3  ;;  %s396_s17 = int_to_ptr.hbm [resolvable:$true] %s395_s17 }
  0x44   : > { %v254_v16 = vrot.slane %v248_v13, 7  ;;  %v264_v17 = vrot.slane %v248_v13, 1  ;;  %v256_v18 = vrot.slane %v250_v15, 7  ;;  %v265_v19 = vrot.slane %v249_v14, 1  ;;  %s383_s27 = scalar_lea.sflag [#allocation4], %s834_s25  ;;  %s642_s22 = sshra.s32 %s396_s17, 4  ;;  %s643_s22 = int_to_ptr.hbm [resolvable:$true] %s642_s22 }
  0x45   : > { %v251_v20 = vsel %vm214_vm7, %v248_v13, 3  ;;  %v252_v21 = vsel %vm214_vm7, %v249_v14, 3  ;;  %v255_v25 = vrot.slane %v249_v14, 7  ;;  %v266_v28 = vrot.slane %v250_v15, 1  ;;  %s644_s5 = scalar_lea.hbm %s643_s22, 1  ;;  %s648_s6 = scalar_lea.hbm %s913_s2, 2 }
  0x46   : > { %v290_v22 = vrot.slane %v251_v20, 7  ;;  %v299_v23 = vrot.slane %v251_v20, 1  ;;  %v300_v24 = vrot.slane %v252_v21, 1  ;;  %v259_v26 = vsel %vm257_vm0, %v256_v18, %v254_v16  ;;  %p645_p6 = scmp.ne.s32.totalorder %s643_s22, %s644_s5  ;;  %p649_p2 = scmp.lt.s32.totalorder %s643_s22, %s913_s2 }
  0x47   : > { %v269_v27 = vsel %vm267_vm8, %v264_v17, %v265_v19  ;;  %v291_v29 = vrot.slane %v252_v21, 7  ;;  %vm260_vm9 = vcmp.gt.s32.totalorder %v259_v26, %v248_v13  ;;  %v258_v32 = vsel %vm257_vm0, %v254_v16, %v255_v25  ;;  %p650_p3 = scmp.lt.s32.totalorder %s648_s6, %s644_s5 }
  0x48   : > { %v294_v30 = vsel %vm257_vm0, %v292_v7, %v290_v22  ;;  %v303_v31 = vsel %vm267_vm8, %v299_v23, %v300_v24  ;;  %v261_v33 = vsel %vm260_vm9, %v259_v26, %v248_v13  ;;  %vm262_vm11 = vcmp.gt.s32.totalorder %v258_v32, %v249_v14  ;;  %p646_p13 = pnand %p645_p6, %p768_p11 }
  0x49   : > { %vm295_vm10 = vcmp.lt.s32.totalorder %v294_v30, %v251_v20  ;;  %vm270_vm12 = vcmp.gt.s32.totalorder %v261_v33, %v269_v27  ;;  %v268_v35 = vsel %vm267_vm8, %v265_v19, %v266_v28  ;;  %v293_v36 = vsel %vm257_vm0, %v290_v22, %v291_v29  ;;  %p651_p4 = por %p650_p3, %p649_p2 }
  0x4a   : > { %v296_v34 = vsel %vm295_vm10, %v294_v30, %v251_v20  ;;  %v271_v37 = vsel %vm270_vm12, %v261_v33, %v269_v27  ;;  %v263_v38 = vsel %vm262_vm11, %v258_v32, %v249_v14  ;;  %vm297_vm14 = vcmp.lt.s32.totalorder %v293_v36, %v252_v21  ;;  %p647_p1 = pneg %p646_p13 }
  0x4b   : > { %vm304_vm13 = vcmp.lt.s32.totalorder %v296_v34, %v303_v31  ;;  %274 = vrot.lane.b32.xlu0 %v271_v37, %s704_s19  ;;  %v298_v40 = vsel %vm297_vm14, %v293_v36, %v252_v21  ;;  %v302_v41 = vsel %vm267_vm8, %v300_v24, %v301_v8  ;;  %282 = vrot.lane.b32.xlu2 %v271_v37, %s705_s7  ;;  %vm915_vm12 = vcmask 130048  }
  0x4c   : > { %v305_v39 = vsel %vm304_vm13, %v296_v34, %v303_v31  ;;  %vm272_vm15 = vcmp.gt.s32.totalorder %v263_v38, %v268_v35  ;;  %vm306_vm0 = vcmp.lt.s32.totalorder %v298_v40, %v302_v41  ;;  %vm223_vm1 = vcmp.gt.f32.partialorder %v490_v45, %v218_v44  ;;  %p652_p5 = pnand %p651_p4, %p647_p1 }
  0x4d   : > { %308 = vrot.lane.b32.xlu1 %v305_v39, %s704_s19  ;;  %v273_v42 = vsel %vm272_vm15, %v263_v38, %v268_v35  ;;  %v307_v43 = vsel %vm306_vm0, %v298_v40, %v302_v41  ;;  %v227_v47 = vsel %vm223_vm1, %v490_v45, %v218_v44  ;;  %v225_v53 = vsel %vm223_vm1, 1, %v703_v9 }
  0x4e   : > { %vm232_vm3 = vcmp.gt.f32.partialorder %v492_v48, %v227_v47  ;;  %vm224_vm4 = vcmp.gt.f32.partialorder %v491_v50, %v219_v49  ;;  %v706_v3 = vmov 0.0  }
  0x4f   : > { %v234_v55 = vsel %vm232_vm3, 2, %v225_v53  ;;  %v228_v57 = vsel %vm224_vm4, %v491_v50, %v219_v49  ;;  %v226_v59 = vsel %vm224_vm4, 1, %v703_v9 }
  0x50   : > { %vm233_vm8 = vcmp.gt.f32.partialorder %v493_v58, %v228_v57 }
  0x51   : > { %v235_v0 = vsel %vm233_vm8, 2, %v226_v59 }
  0x53   : > { %276 = vrot.lane.b32.xlu0 %v273_v42, %s704_s19  ;;  %284 = vrot.lane.b32.xlu2 %v273_v42, %s705_s7 }
  0x55   : > { %310 = vrot.lane.b32.xlu1 %v307_v43, %s704_s19 }
  0x5b   : > { %316 = vrot.lane.b32.xlu0 %v305_v39, %s705_s7 }
  0x5d   : > { %318 = vrot.lane.b32.xlu1 %v307_v43, %s705_s7 }
  0xa5   : > { %v283_v46 = vpop.permute.xlu2 %282 }
  0xad   : > { %v285_v61 = vpop.permute.xlu2 %284 }
  0xbd   : > { %v275_v51 = vpop.permute.xlu0 %274 }
  0xbe   : > { %vm278_vm2 = vcmp.gt.s32.totalorder %v275_v51, %v271_v37 }
  0xbf   : > { %v309_v52 = vpop.permute.xlu1 %308  ;;  %v279_v54 = vsel %vm278_vm2, %v275_v51, %v271_v37 }
  0xc0   : > { %vm286_vm5 = vcmp.gt.s32.totalorder %v279_v54, %v283_v46  ;;  %vm312_vm13 = vcmp.lt.s32.totalorder %v309_v52, %v305_v39 }
  0xc1   : > { %v287_v56 = vsel %vm286_vm5, %v279_v54, %v283_v46  ;;  %v313_v6 = vsel %vm312_vm13, %v309_v52, %v305_v39  ;;  %vm340_vm13 = vcmp.ne.s32.totalorder %v234_v55, 0 }
  0xc2   : > { %vm334_vm6 = vcmp.eq.s32.totalorder %v287_v56, %v234_v55  ;;  %vm336_vm7 = vcmp.ne.s32.totalorder %v287_v56, 0  ;;  %vm328_vm4 = vcmp.eq.s32.totalorder %v287_v56, 1 }
  0xc3   : > { %vm338_vm10 = vmand %vm334_vm6, %vm336_vm7 }
  0xc4   : > { %v494_v4 = vsel %vm338_vm10, 1.0, %v706_v3 }
  0xc5   : > { %v277_v60 = vpop.permute.xlu0 %276  ;;  %v349_v8 = vsel %vm915_vm12, %v494_v4, 0.0 }
  0xc6   : > { %vm280_vm9 = vcmp.gt.s32.totalorder %v277_v60, %v273_v42 }
  0xc7   : > { %v311_v62 = vpop.permute.xlu1 %310  ;;  %v281_v63 = vsel %vm280_vm9, %v277_v60, %v273_v42 }
  0xc8   : > { %vm288_vm11 = vcmp.gt.s32.totalorder %v281_v63, %v285_v61  ;;  %vm314_vm0 = vcmp.lt.s32.totalorder %v311_v62, %v307_v43 }
  0xc9   : > { %v289_v1 = vsel %vm288_vm11, %v281_v63, %v285_v61  ;;  %v315_v10 = vsel %vm314_vm0, %v311_v62, %v307_v43 }
  0xca   : > { %vm335_vm14 = vcmp.eq.s32.totalorder %v289_v1, %v235_v0  ;;  %vm337_vm15 = vcmp.ne.s32.totalorder %v289_v1, 0  ;;  %vm329_vm10 = vcmp.eq.s32.totalorder %v289_v1, 1 }
  0xcb   : > { %vm339_vm1 = vmand %vm335_vm14, %vm337_vm15  ;;  %vm341_vm15 = vcmp.ne.s32.totalorder %v235_v0, 0 }
  0xcc   : > { %v495_v5 = vsel %vm339_vm1, 1.0, %v706_v3 }
  0xcd   : > { %v317_v7 = vpop.permute.xlu0 %316  ;;  %v350_v9 = vsel %vm915_vm12, %v495_v5, 0.0 }
  0xce   : > { %vm320_vm2 = vcmp.lt.s32.totalorder %v313_v6, %v317_v7  ;;  %v351_v12 = vadd.f32 %v350_v9, %v349_v8 }
  0xcf   : > { %v319_v11 = vpop.permute.xlu1 %318  ;;  %v321_v13 = vsel %vm320_vm2, %v313_v6, %v317_v7  ;;  %vm922_vm2 = vcmask 130048  }
  0xd0   : > { %vm322_vm3 = vcmp.lt.s32.totalorder %v315_v10, %v319_v11  ;;  %vm324_vm5 = vcmp.eq.s32.totalorder %v321_v13, 2  ;;  %vm326_vm6 = vcmp.eq.s32.totalorder %v321_v13, 1  ;;  %352 = vadd.xlane.f32.xlu2 %v351_v12 }
  0xd1   : > { %v323_v14 = vsel %vm322_vm3, %v315_v10, %v319_v11  ;;  %vm330_vm7 = vmand %vm326_vm6, %vm328_vm4 }
  0xd2   : > { %vm325_vm8 = vcmp.eq.s32.totalorder %v323_v14, 2  ;;  %vm327_vm9 = vcmp.eq.s32.totalorder %v323_v14, 1  ;;  %vm332_vm11 = vmor %vm324_vm5, %vm330_vm7 }
  0xd3   : > { %vm331_vm14 = vmand %vm327_vm9, %vm329_vm10 }
  0xd4   : > { %vm333_vm1 = vmor %vm325_vm8, %vm331_vm14 }
  0xd5   : > { %vm342_vm12 = vmor %vm332_vm11, %vm340_vm13 }
  0xd6   : > { %vm343_vm0 = vmor %vm333_vm1, %vm341_vm15  ;;  %v496_v15 = vsel %vm342_vm12, 1.0, %v706_v3  ;;  %vm377_vm12 = vcmp.lt.s32.totalorder %v850_v2, 1 }
  0xd7   : > { %v497_v16 = vsel %vm343_vm0, 1.0, %v706_v3  ;;  %v365_v17 = vsel %vm922_vm2, %v496_v15, 0.0  ;;  %vm923_vm3 = vmmov %vm922_vm2 }
  0xd8   : > { %v366_v18 = vsel %vm923_vm3, %v497_v16, 0.0 }
  0xd9   : > { %v367_v19 = vadd.f32 %v366_v18, %v365_v17 }
  0xdb   : > { %368 = vadd.xlane.f32.xlu0 %v367_v19 }
 0x143   : > { %v353_v20 = vpop.xlane.xlu2 %352 }
 0x144   : > { %v354_v21 = vrot.slane %v353_v20, 4 }
 0x146   : > { %v355_v22 = vadd.f32 %v354_v21, %v353_v20 }
 0x148   : > { %v356_v23 = vrot.slane %v355_v22, 2 }
 0x14a   : > { %v357_v24 = vadd.f32 %v356_v23, %v355_v22 }
 0x14c   : > { %v358_v25 = vrot.slane %v357_v24, 1 }
 0x14e   : > { %v369_v26 = vpop.xlane.xlu0 %368  ;;  %v359_v27 = vadd.f32 %v358_v25, %v357_v24 }
 0x14f   : > { %v370_v28 = vrot.slane %v369_v26, 4 }
 0x150   : > { %506 = vpush %v359_v27 }
 0x151   : > { %v371_v29 = vadd.f32 %v370_v28, %v369_v26 }
 0x153   : > { %v372_v30 = vrot.slane %v371_v29, 2 }
 0x155   : > { %v373_v31 = vadd.f32 %v372_v30, %v371_v29 }
 0x157   : > { %v374_v32 = vrot.slane %v373_v31, 1 }
 0x159   : > { %v375_v33 = vadd.f32 %v374_v32, %v373_v31 }
 0x15b   : > { %508 = vpush %v375_v33 }
 0x181   : > { %s507_s4 = spop %506 }
 0x182   : > { %v378_v34 = vstv %s507_s4 }
 0x18c   : > { %s509_s30 = spop %508 }
 0x18d   : > { %v379_v35 = vstv %s509_s30 }
 0x18e   : > { %v380_v36 = vsel %vm377_vm12, %v378_v34, %v379_v35 }
 0x18f   : > { %381 = vst [vmem:[%s204_s29] sm:$0x1] %v380_v36 }
 0x190   : > { %655 = shalt.err (!%p652_p5)
}
 0x191   : > { %514 = dma.vmem_to_hbm [thread:$0]  (%p768_p11), %s394_s3, 16, %s396_s17, %s383_s27  }
 0x192 PF: > { %s407_s25 = sand.u32 1, %s686_s9   ;;  %p524_p7 = pnand %p486_p9, %p772_p12 }
 0x193   : > { %s408_s26 = scalar_lea.sflag [#allocation4], %s407_s25 }
 0x194   : > { %p525_p8 = pneg %p524_p7 }
 0x196   : > { %681 = dma.done.wait (%p525_p8), %s408_s26, 16  }
 0x197   : > { %683 = vsyncadd (%p525_p8), %s408_s26, 4294967280  ;;  %p18_p10 = scmp.ge.s32.totalorder %s747_s15, 4   ;;  %s924_s9 = smov %s690_s10 }
 0x198   : > { %s925_s10 = smov %s694_s11  ;;  %s926_s11 = smov %s759_s18 }
 0x199   : > { %s927_s12 = smov %s747_s15  ;;  %20 = sbr.rel (!%p18_p10) target bundleno = 7 (0x7), region = 88 }
 0x19e   :  { %413 = vsyncpa [#allocation3], 1 }
 0x19f   :  { %415 = vsyncpa [#allocation3 + $0x1], 1 }
 0x1a0   :  { %416 = vsyncpa [#allocation6], 1 }
 0x1a1   :  { %418 = vsyncpa [#allocation6 + $0x1], 1 }
 0x1a2   :  { %419 = vsyncpa [#allocation4], 1 }
 0x1a3   :  { %421 = vsyncpa [#allocation4 + $0x1], 1 }

</bundles_post_ra>
